<compile_context>
chip_gen: v5e
topology: v5e:2x2
jax: 0.10.0
libtpu: 0.0.40
codegen_flags: <defaults>
</compile_context>

<pallas_src>
import functools

import jax
import jax.numpy as jnp
from jax.experimental import pallas as pl
from jax.experimental.pallas import tpu as pltpu

_LANES = 128
_SUBLANES = 8
_CHUNK = _SUBLANES * _LANES            # main region aligned to whole (8,128) vregs
_VMEM_INPUT_BUDGET = 8 * 1024 * 1024   # target for 2 inputs x 2 pipeline buffers


def _nmse_partial_kernel(shift_ref, p_ref, t_ref, acc_ref, *,
                         rows_valid, tile_rows, tiles_per_slice, sub_rows,
                         needs_mask):
    """Accumulate lane-parallel partial sums into this slice's (3, 8, 128) block:
         acc[0] += groupwise sum of (p - t)^2
         acc[1] += groupwise sum of (t - shift)
         acc[2] += groupwise sum of (t - shift)^2
    Cross-lane reduction and the final divide happen in the JAX wrapper.
    """
    s = pl.program_id(0)   # slice axis ("parallel": shardable across cores)
    k = pl.program_id(1)   # reduction axis ("arbitrary")

    # Zero this slice's resident accumulator once, keyed on the reduction axis
    # only; each slice owns a distinct output block -> no cross-core race.
    @pl.when(k == 0)
    def _():
        acc_ref[...] = jnp.zeros_like(acc_ref)

    shift = shift_ref[0]                                    # f32 scalar (SMEM)
    tile_row0 = (s * tiles_per_slice + k) * tile_rows       # logical, unclamped

    n_full = tile_rows // sub_rows
    rem_rows = tile_rows - n_full * sub_rows                # static, multiple of 8

    def chunk_sums(row_off, rows, masked):
        p = p_ref[pl.ds(row_off, rows), :].astype(jnp.float32)
        t = t_ref[pl.ds(row_off, rows), :].astype(jnp.float32)
        d = p - t
        ts = t - shift
        if masked:
            # Mask BEFORE squaring/summing: the select discards padded garbage
            # (including NaN) from ragged / padding tiles.
            rid = (tile_row0 + row_off
                   + jax.lax.broadcasted_iota(jnp.int32, (rows, _LANES), 0))
            keep = rid < rows_valid
            d = jnp.where(keep, d, 0.0)
            ts = jnp.where(keep, ts, 0.0)
        g = rows // _SUBLANES
        c_d2 = jnp.sum((d * d).reshape(g, _SUBLANES, _LANES), axis=0)
        c_ts = jnp.sum(ts.reshape(g, _SUBLANES, _LANES), axis=0)
        c_t2 = jnp.sum((ts * ts).reshape(g, _SUBLANES, _LANES), axis=0)
        return c_d2, c_ts, c_t2

    def accumulate(masked):
        zero = jnp.zeros((_SUBLANES, _LANES), jnp.float32)
        acc = (zero, zero, zero)
        if n_full > 0:
            def body(j, carry):
                a0, a1, a2 = carry
                off = pl.multiple_of(j * sub_rows, sub_rows)
                c0, c1, c2 = chunk_sums(off, sub_rows, masked)
                return a0 + c0, a1 + c1, a2 + c2
            acc = jax.lax.fori_loop(0, n_full, body, acc,
                                    unroll=(n_full <= 8))
        if rem_rows > 0:
            c0, c1, c2 = chunk_sums(n_full * sub_rows, rem_rows, masked)
            acc = (acc[0] + c0, acc[1] + c1, acc[2] + c2)
        acc_ref[0] += acc[0]
        acc_ref[1] += acc[1]
        acc_ref[2] += acc[2]

    if not needs_mask:
        # Coverage is exact at trace time: mask code is never emitted.
        accumulate(masked=False)
    else:
        in_bounds = tile_row0 + tile_rows <= rows_valid

        @pl.when(in_bounds)
        def _():
            accumulate(masked=False)

        @pl.when(jnp.logical_not(in_bounds))
        def _():
            accumulate(masked=True)


def nmse_loss(prediction, target, *, tile_rows=None, sub_rows=256):
    """Scalar f32 NMSE loss == mean((p-t)^2) / var(t, unbiased=False).

    tile_rows: row-tile height (multiple of 8). Default is dtype-aware so that
    the double-buffered input footprint is ~8 MiB (4096 rows for f32 inputs,
    8192 for bf16) — under the scoped-VMEM default on v5e/v6e/v7x. If you push
    far past that, vmem_limit_bytes is raised automatically (conservatively).
    sub_rows: in-kernel sub-chunk height for the live-range-bounding loop.
    """
    assert prediction.shape == target.shape, "shapes must match"
    assert sub_rows % _SUBLANES == 0 and sub_rows > 0
    n = prediction.size
    assert n > 0

    flat_p = prediction.reshape(-1)   # native dtype: no wrapper f32 copy
    flat_t = target.reshape(-1)

    # Shift for a numerically stable (shift-invariant) variance.
    shift = flat_t[:1].astype(jnp.float32)          # (1,), placed in SMEM

    n_main = (n // _CHUNK) * _CHUNK
    rows_main = n_main // _LANES                    # multiple of 8

    p_item = jnp.dtype(prediction.dtype).itemsize
    t_item = jnp.dtype(target.dtype).itemsize

    if tile_rows is None:
        tile_rows = _VMEM_INPUT_BUDGET // (_LANES * (p_item + t_item) * 2)
        tile_rows = max(_SUBLANES, (tile_rows // _SUBLANES) * _SUBLANES)
    assert tile_rows % _SUBLANES == 0, "tile_rows must be a multiple of 8"

    if rows_main > 0:
        eff_tile = min(tile_rows, rows_main)
        tiles_total = pl.cdiv(rows_main, eff_tile)
        num_slices = 2 if tiles_total >= 2 else 1       # leading "parallel" axis
        tiles_per_slice = pl.cdiv(tiles_total, num_slices)
        # Mask is only emitted if some tile overhangs the valid rows (ragged
        # last tile or a padding tile when slices don't divide tiles evenly).
        needs_mask = num_slices * tiles_per_slice * eff_tile > rows_main

        # NOTE: when n % 1024 != 0 this prefix slice may copy in XLA; the
        # aligned path (typical DL shapes) is zero-copy.
        p2d = flat_p[:n_main].reshape(rows_main, _LANES)
        t2d = flat_t[:n_main].reshape(rows_main, _LANES)

        kernel = functools.partial(
            _nmse_partial_kernel, rows_valid=rows_main, tile_rows=eff_tile,
            tiles_per_slice=tiles_per_slice, sub_rows=sub_rows,
            needs_mask=needs_mask)

        def in_idx(s, k):
            # Clamp the logical tile index so padding tiles re-read the last
            # valid block instead of issuing an OOB DMA; their contribution is
            # masked to zero in-kernel.
            return (jnp.minimum(s * tiles_per_slice + k, tiles_total - 1), 0)

        out_rows = 3 * num_slices
        bytes_accessed = (p2d.size * p_item + t2d.size * t_item
                          + out_rows * _SUBLANES * _LANES * 4)

        # Double-buffered input footprint; only raise the VMEM limit if a
        # user-supplied tile pushes past the conservative default.
        input_block_bytes = eff_tile * _LANES * (p_item + t_item) * 2
        vmem_limit = None
        if input_block_bytes > 12 * 1024 * 1024:
            vmem_limit = int(min(input_block_bytes + (4 << 20), 64 << 20))

        acc = pl.pallas_call(
            kernel,
            out_shape=jax.ShapeDtypeStruct((out_rows, _SUBLANES, _LANES),
                                           jnp.float32),
            grid_spec=pltpu.PrefetchScalarGridSpec(
                num_scalar_prefetch=0,
                grid=(num_slices, tiles_per_slice),
                in_specs=[
                    pl.BlockSpec(memory_space=pltpu.MemorySpace.SMEM),  # shift
                    pl.BlockSpec((eff_tile, _LANES), in_idx),           # pred
                    pl.BlockSpec((eff_tile, _LANES), in_idx),           # targ
                ],
                out_specs=pl.BlockSpec((3, _SUBLANES, _LANES),
                                       lambda s, k: (s, 0, 0)),
            ),
            compiler_params=pltpu.CompilerParams(
                dimension_semantics=("parallel", "arbitrary"),
                vmem_limit_bytes=vmem_limit),
            cost_estimate=pl.CostEstimate(
                flops=7 * n_main, transcendentals=0,
                bytes_accessed=int(bytes_accessed)),
        )(shift, p2d, t2d)

        sums = jnp.sum(acc.reshape(num_slices, 3, _SUBLANES, _LANES),
                       axis=(0, 2, 3))               # tiny reduce in JAX
        sum_d2, sum_ts, sum_ts2 = sums[0], sums[1], sums[2]
    else:
        sum_d2 = jnp.float32(0.0)
        sum_ts = jnp.float32(0.0)
        sum_ts2 = jnp.float32(0.0)

    # Ragged tail (< 1024 elements): tiny JAX epilogue, no padding copies.
    if n_main < n:
        tp = flat_p[n_main:].astype(jnp.float32)
        tt = flat_t[n_main:].astype(jnp.float32)
        td = tp - tt
        tts = tt - shift[0]
        sum_d2 = sum_d2 + jnp.sum(td * td)
        sum_ts = sum_ts + jnp.sum(tts)
        sum_ts2 = sum_ts2 + jnp.sum(tts * tts)

    n_f = jnp.float32(n)
    mse = sum_d2 / n_f
    mean_s = sum_ts / n_f
    var = sum_ts2 / n_f - mean_s * mean_s  # shift-invariant, unbiased=False
    # NOTE: var == 0 (constant target) -> inf/nan, same as the PyTorch module.
    return mse / var


def nmse_loss_ref(prediction, target):
    p = prediction.astype(jnp.float32)
    t = target.astype(jnp.float32)
    mse = jnp.mean((p - t) ** 2)
    var = jnp.mean((t - jnp.mean(t)) ** 2)
    return mse / var


if __name__ == "__main__":
    key = jax.random.PRNGKey(0)
    k1, k2, k3, k4, k5, k6 = jax.random.split(key, 6)

    ok = True

    # 1) NCHW-like regression output: aligned, single tile, single slice.
    shape1 = (2, 4, 16, 16)
    p1 = jax.random.normal(k1, shape1, dtype=jnp.float32)
    t1 = jax.random.normal(k2, shape1, dtype=jnp.float32) * 1.5 + 0.3
    out1 = nmse_loss(p1, t1)
    jax.block_until_ready(out1)
    ref1 = nmse_loss_ref(p1, t1)
    ok &= bool(jnp.allclose(out1, ref1, rtol=1e-4, atol=1e-6))

    # 2) Ragged shape + tiny tile: 2-slice grid with a padding tile, masked
    #    partial last tile (pl.when fast/slow paths), and the JAX tail.
    shape2 = (4, 8, 165)
    p2 = jax.random.normal(k3, shape2, dtype=jnp.float32)
    t2 = jax.random.normal(k4, shape2, dtype=jnp.float32) * 0.7 + 2.0
    out2 = nmse_loss(p2, t2, tile_rows=16)
    jax.block_until_ready(out2)
    ref2 = nmse_loss_ref(p2, t2)
    ok &= bool(jnp.allclose(out2, ref2, rtol=1e-4, atol=1e-6))

    # 3) bf16 inputs stream in their native dtype (no wrapper f32 copy).
    p3 = p1.astype(jnp.bfloat16)
    t3 = t1.astype(jnp.bfloat16)
    out3 = nmse_loss(p3, t3)
    jax.block_until_ready(out3)
    ref3 = nmse_loss_ref(p3, t3)
    ok &= bool(jnp.allclose(out3, ref3, rtol=1e-3, atol=1e-5))

    # 4) Bigger aligned case: exercises the in-kernel sub-chunk fori_loop.
    shape4 = (4, 8, 64, 64)
    p4 = jax.random.normal(k5, shape4, dtype=jnp.float32)
    t4 = jax.random.normal(k6, shape4, dtype=jnp.float32) * 1.1 - 0.5
    out4 = nmse_loss(p4, t4)
    jax.block_until_ready(out4)
    ref4 = nmse_loss_ref(p4, t4)
    ok &= bool(jnp.allclose(out4, ref4, rtol=1e-4, atol=1e-6))

    # 5) Same data, forced 2-slice split with exact coverage (no masking).
    out5 = nmse_loss(p4, t4, tile_rows=512)
    jax.block_until_ready(out5)
    ok &= bool(jnp.allclose(out5, ref4, rtol=1e-4, atol=1e-6))

    assert ok, ((out1, ref1), (out2, ref2), (out3, ref3), (out4, ref4), out5)
    print("KERNEL_OK")
</pallas_src>

<mosaic_0001>
module attributes {stable_mosaic.version = 11 : i64} {
  func.func @_nmse_partial_kernel(%arg0: i32, %arg1: i32, %arg2: memref<1xf32, #tpu.memory_space<smem>>, %arg3: memref<16x128xf32, #tpu.memory_space<vmem>>, %arg4: memref<16x128xf32, #tpu.memory_space<vmem>>, %arg5: memref<3x8x128xf32, #tpu.memory_space<vmem>>) attributes {dimension_semantics = [#tpu.dimension_semantics<parallel>, #tpu.dimension_semantics<arbitrary>], iteration_bounds = array<i64: 1, 1>, scalar_prefetch = 0 : i64, scratch_operands = 0 : i64, tpu.core_type = #tpu.core_type<tc>, window_params = [{transform_indices = @transform_0, window_bounds = array<i64: 1>}, {transform_indices = @transform_1, window_bounds = array<i64: 16, 128>}, {transform_indices = @transform_2, window_bounds = array<i64: 16, 128>}, {transform_indices = @transform_3, window_bounds = array<i64: 3, 8, 128>}]} {
    %c0_i32 = arith.constant 0 : i32
    %0 = arith.cmpi eq, %arg1, %c0_i32 : i32
    %1 = arith.extui %0 : i1 to i32
    %c0_i32_0 = arith.constant 0 : i32
    %2 = arith.cmpi ne, %1, %c0_i32_0 : i32
    scf.if %2 {
      %cst_24 = arith.constant 0.000000e+00 : f32
      %39 = vector.broadcast %cst_24 : f32 to vector<3x8x128xf32>
      %c0_25 = arith.constant 0 : index
      %c0_26 = arith.constant 0 : index
      %c0_27 = arith.constant 0 : index
      %40 = vector.load %arg5[%c0_25, %c0_26, %c0_27] : memref<3x8x128xf32, #tpu.memory_space<vmem>>, vector<3x8x128xf32>
      tpu.vector_store %arg5[%c0_25, %c0_26, %c0_27], %39 {strides = array<i32>} : memref<3x8x128xf32, #tpu.memory_space<vmem>>, vector<3x8x128xf32>,
    } else {
    }
    %c0 = arith.constant 0 : index
    %3 = memref.load %arg2[%c0] : memref<1xf32, #tpu.memory_space<smem>>
    %cst = arith.constant 0.000000e+00 : f32
    %4 = vector.broadcast %cst : f32 to vector<8x128xf32>
    %c0_1 = arith.constant 0 : index
    %c0_2 = arith.constant 0 : index
    %5 = vector.load %arg3[%c0_1, %c0_2] : memref<16x128xf32, #tpu.memory_space<vmem>>, vector<16x128xf32>
    %c0_3 = arith.constant 0 : index
    %c0_4 = arith.constant 0 : index
    %6 = vector.load %arg4[%c0_3, %c0_4] : memref<16x128xf32, #tpu.memory_space<vmem>>, vector<16x128xf32>
    %7 = arith.subf %5, %6 : vector<16x128xf32>
    %8 = vector.broadcast %3 : f32 to vector<16x128xf32>
    %9 = arith.subf %6, %8 : vector<16x128xf32>
    %10 = arith.mulf %7, %7 : vector<16x128xf32>
    %11 = vector.shape_cast %10 : vector<16x128xf32> to vector<2x8x128xf32>
    %cst_5 = arith.constant dense<0.000000e+00> : vector<8x128xf32>
    %12 = vector.multi_reduction <add>, %11, %cst_5 [0] : vector<2x8x128xf32> to vector<8x128xf32>
    %13 = vector.shape_cast %9 : vector<16x128xf32> to vector<2x8x128xf32>
    %cst_6 = arith.constant dense<0.000000e+00> : vector<8x128xf32>
    %14 = vector.multi_reduction <add>, %13, %cst_6 [0] : vector<2x8x128xf32> to vector<8x128xf32>
    %15 = arith.mulf %9, %9 : vector<16x128xf32>
    %16 = vector.shape_cast %15 : vector<16x128xf32> to vector<2x8x128xf32>
    %cst_7 = arith.constant dense<0.000000e+00> : vector<8x128xf32>
    %17 = vector.multi_reduction <add>, %16, %cst_7 [0] : vector<2x8x128xf32> to vector<8x128xf32>
    %18 = arith.addf %4, %12 : vector<8x128xf32>
    %19 = arith.addf %4, %14 : vector<8x128xf32>
    %20 = arith.addf %4, %17 : vector<8x128xf32>
    %c0_8 = arith.constant 0 : index
    %c0_9 = arith.constant 0 : index
    %c0_10 = arith.constant 0 : index
    %21 = vector.load %arg5[%c0_8, %c0_9, %c0_10] : memref<3x8x128xf32, #tpu.memory_space<vmem>>, vector<1x8x128xf32>
    %22 = vector.shape_cast %21 : vector<1x8x128xf32> to vector<8x128xf32>
    %23 = arith.addf %22, %18 : vector<8x128xf32>
    %c0_11 = arith.constant 0 : index
    %c0_12 = arith.constant 0 : index
    %c0_13 = arith.constant 0 : index
    %24 = vector.load %arg5[%c0_11, %c0_12, %c0_13] : memref<3x8x128xf32, #tpu.memory_space<vmem>>, vector<1x8x128xf32>
    %25 = vector.shape_cast %24 : vector<1x8x128xf32> to vector<8x128xf32>
    %26 = vector.shape_cast %23 : vector<8x128xf32> to vector<1x8x128xf32>
    tpu.vector_store %arg5[%c0_11, %c0_12, %c0_13], %26 {strides = array<i32>} : memref<3x8x128xf32, #tpu.memory_space<vmem>>, vector<1x8x128xf32>,
    %c1 = arith.constant 1 : index
    %c0_14 = arith.constant 0 : index
    %c0_15 = arith.constant 0 : index
    %27 = vector.load %arg5[%c1, %c0_14, %c0_15] : memref<3x8x128xf32, #tpu.memory_space<vmem>>, vector<1x8x128xf32>
    %28 = vector.shape_cast %27 : vector<1x8x128xf32> to vector<8x128xf32>
    %29 = arith.addf %28, %19 : vector<8x128xf32>
    %c1_16 = arith.constant 1 : index
    %c0_17 = arith.constant 0 : index
    %c0_18 = arith.constant 0 : index
    %30 = vector.load %arg5[%c1_16, %c0_17, %c0_18] : memref<3x8x128xf32, #tpu.memory_space<vmem>>, vector<1x8x128xf32>
    %31 = vector.shape_cast %30 : vector<1x8x128xf32> to vector<8x128xf32>
    %32 = vector.shape_cast %29 : vector<8x128xf32> to vector<1x8x128xf32>
    tpu.vector_store %arg5[%c1_16, %c0_17, %c0_18], %32 {strides = array<i32>} : memref<3x8x128xf32, #tpu.memory_space<vmem>>, vector<1x8x128xf32>,
    %c2 = arith.constant 2 : index
    %c0_19 = arith.constant 0 : index
    %c0_20 = arith.constant 0 : index
    %33 = vector.load %arg5[%c2, %c0_19, %c0_20] : memref<3x8x128xf32, #tpu.memory_space<vmem>>, vector<1x8x128xf32>
    %34 = vector.shape_cast %33 : vector<1x8x128xf32> to vector<8x128xf32>
    %35 = arith.addf %34, %20 : vector<8x128xf32>
    %c2_21 = arith.constant 2 : index
    %c0_22 = arith.constant 0 : index
    %c0_23 = arith.constant 0 : index
    %36 = vector.load %arg5[%c2_21, %c0_22, %c0_23] : memref<3x8x128xf32, #tpu.memory_space<vmem>>, vector<1x8x128xf32>
    %37 = vector.shape_cast %36 : vector<1x8x128xf32> to vector<8x128xf32>
    %38 = vector.shape_cast %35 : vector<8x128xf32> to vector<1x8x128xf32>
    tpu.vector_store %arg5[%c2_21, %c0_22, %c0_23], %38 {strides = array<i32>} : memref<3x8x128xf32, #tpu.memory_space<vmem>>, vector<1x8x128xf32>,
    return
  }
  func.func @transform_0(%arg0: i32, %arg1: i32) -> i32 {
    %c0_i32 = arith.constant 0 : i32
    %c0_i32_0 = arith.constant 0 : i32
    return %c0_i32 : i32
  }
  func.func @transform_1(%arg0: i32, %arg1: i32) -> (i32, i32) {
    %c1_i32 = arith.constant 1 : i32
    %0 = arith.muli %arg0, %c1_i32 : i32
    %1 = arith.addi %0, %arg1 : i32
    %c0_i32 = arith.constant 0 : i32
    %2 = arith.minsi %1, %c0_i32 : i32
    %c0_i32_0 = arith.constant 0 : i32
    %c0_i32_1 = arith.constant 0 : i32
    return %2, %c0_i32_0 : i32, i32
  }
  func.func @transform_2(%arg0: i32, %arg1: i32) -> (i32, i32) {
    %c1_i32 = arith.constant 1 : i32
    %0 = arith.muli %arg0, %c1_i32 : i32
    %1 = arith.addi %0, %arg1 : i32
    %c0_i32 = arith.constant 0 : i32
    %2 = arith.minsi %1, %c0_i32 : i32
    %c0_i32_0 = arith.constant 0 : i32
    %c0_i32_1 = arith.constant 0 : i32
    return %2, %c0_i32_0 : i32, i32
  }
  func.func @transform_3(%arg0: i32, %arg1: i32) -> (i32, i32, i32) {
    %c0_i32 = arith.constant 0 : i32
    %c0_i32_0 = arith.constant 0 : i32
    %c0_i32_1 = arith.constant 0 : i32
    return %arg0, %c0_i32, %c0_i32_0 : i32, i32, i32
  }
}

</mosaic_0001>

<bundles_post_ra>
// kernel: tpu_custom_call.1
= control target key start
LH: loop header
LB: loop body
LE: loop exit
PB: predicated region body
PF: predicated region fallthrough
CT: control target
= control target key end

     0   :  { %9 = vsyncpa [#allocation4], 0  ;;  %s260_s0 = inlined_call_operand.<no memory space> [shape: f32[1], index: 0, kind: input, shape index: {}]   ;;  %s261_s1 = inlined_call_operand.hbm [shape: f32[16,128], index: 1, kind: input, shape index: {}]   ;;  %s262_s2 = inlined_call_operand.hbm [shape: f32[16,128], index: 2, kind: input, shape index: {}]   ;;  %s263_s3 = inlined_call_operand.hbm [shape: f32[3,8,128], index: 3, kind: output, shape index: {}]  }
   0x1   :  { %10 = vsyncpa [#allocation7], 0 }
   0x2   :  { %11 = vsyncpa [#allocation5], 0  ;;  %s24_s14 = sshll.u32 %s261_s1, 4  ;;  %s214_s15 = smov [#allocation3]   ;;  %s25_s14 = int_to_ptr.hbm [resolvable:$true] %s24_s14 }
   0x3   :  { %s26_s16 = sshll.u32 %s214_s15, 4  ;;  %s43_s19 = sshll.u32 %s262_s2, 4  ;;  %s27_s16 = int_to_ptr.vmem [resolvable:$true] %s26_s16  ;;  %s44_s19 = int_to_ptr.hbm [resolvable:$true] %s43_s19 }
   0x4   :  { %s215_s20 = smov 128   ;;  %s216_s21 = smov 8  }
   0x5   :  { %32 = dma.hbm_to_vmem [thread:$0]  %s25_s14, 256, %s27_s16, [#allocation4], %s215_s20, %s215_s20, %s216_s21  }
   0x6   :  { %s217_s22 = smov [#allocation6]  }
   0x7   :  { %s45_s23 = sshll.u32 %s217_s22, 4  ;;  %s46_s23 = int_to_ptr.vmem [resolvable:$true] %s45_s23 }
   0x8   :  { %51 = dma.hbm_to_vmem [thread:$0]  %s44_s19, 256, %s46_s23, [#allocation7], %s215_s20, %s215_s20, %s216_s21  }
   0x9   :  { %208 = dma.done.wait [#allocation4], 256  }
   0xa   :  { %209 = vsyncadd [#allocation4], 4294967040 }
   0xb   :  { %210 = dma.done.wait [#allocation7], 256  }
   0xc   :  { %211 = vsyncadd [#allocation7], 4294967040  ;;  %v82_v0 = vstv %s260_s0  ;;  %v76_v1 = vld [vmem:[#allocation3] sm:$0xff]  ;;  %v77_v2 = vld [vmem:[#allocation3 + $0x8] sm:$0xff]  ;;  %s218_s24 = smov [#allocation8]   ;;  %s112_s0 = sshll.u32 %s263_s3, 4  ;;  %s113_s0 = int_to_ptr.hbm [resolvable:$true] %s112_s0 }
   0xd   :  { %v78_v3 = vld [vmem:[#allocation6] sm:$0xff]  ;;  %v79_v4 = vld [vmem:[#allocation6 + $0x8] sm:$0xff]  ;;  %s110_s25 = sshll.u32 %s218_s24, 4  ;;  %s111_s25 = int_to_ptr.vmem [resolvable:$true] %s110_s25 }
   0xe   :  { %v80_v5 = vsub.f32 %v76_v1, %v78_v3  ;;  %v83_v6 = vsub.f32 %v78_v3, %v82_v0  ;;  %v81_v7 = vsub.f32 %v77_v2, %v79_v4  ;;  %v84_v8 = vsub.f32 %v79_v4, %v82_v0 }
  0x10   :  { %v85_v9 = vmul.f32 %v80_v5, %v80_v5  ;;  %v89_v10 = vmul.f32 %v83_v6, %v83_v6  ;;  %v86_v11 = vmul.f32 %v81_v7, %v81_v7  ;;  %v88_v12 = vadd.f32 %v84_v8, %v83_v6 }
  0x11   :  { %v90_v13 = vmul.f32 %v84_v8, %v84_v8 }
  0x12   :  { %v87_v14 = vadd.f32 %v86_v11, %v85_v9  ;;  %101 = vst [vmem:[#allocation8 + $0x8] sm:$0xff] %v88_v12 }
  0x13   :  { %v91_v15 = vadd.f32 %v90_v13, %v89_v10 }
  0x14   :  { %97 = vst [vmem:[#allocation8] sm:$0xff] %v87_v14 }
  0x15   :  { %105 = vst [vmem:[#allocation8 + $0x10] sm:$0xff] %v91_v15 }
  0x16   :  { %118 = dma.vmem_to_hbm [thread:$0]  %s111_s25, 384, %s113_s0, [#allocation5], %s215_s20, %s215_s20, %s216_s21  }
  0x17   :  { %212 = dma.done.wait [#allocation5], 384  }
  0x18   :  { %213 = vsyncadd [#allocation5], 4294966912 }
  0x19   :  { %123 = vsyncpa [#allocation4], 1 }
  0x1a   :  { %124 = vsyncpa [#allocation7], 1 }
  0x1b   :  { %125 = vsyncpa [#allocation5], 1 }

</bundles_post_ra>
